<compile_context>
chip_gen: v6e
topology: v6e:2x2x1
jax: 0.10.0
libtpu: 0.0.40
codegen_flags: <defaults>
</compile_context>

<pallas_src>
import functools

import jax
import jax.numpy as jnp
from jax.experimental import pallas as pl
from jax.experimental.pallas import tpu as pltpu

_NEG_INF = -1e30  # padding value for padded logit lanes (masks them in softmax)


def _round_up(x, m):
    return ((x + m - 1) // m) * m


def _rnn_fused_kernel(xs_ref, h0_ref,
                      w_in_ref, w_hh_ref, b_h_ref,
                      w_out_ref, b_out_ref,
                      out_ref, h_out_ref,
                      *, seq_len, bp):
    """Whole-sequence RNN forward in ONE kernel invocation (no grid).

    xs_ref   : (S*Bp, Ap)  all timesteps, flattened over (t, batch)
    h0_ref   : (Bp, Hp)    initial hidden
    w_in_ref : (Ap, Hp)    in2hidden weight (stored in x out)
    w_hh_ref : (Hp, Hp)    hidden2hidden weight (stored in x out)
    b_h_ref  : (1, Hp)     fused bias  b_in + b_hh
    w_out_ref: (Hp, Lp)    hidden2out weight (stored in x out)
    b_out_ref: (1, Lp)     output bias (padded lanes = -1e30)
    out_ref  : (Bp, Lp)    final-step log-probs
    h_out_ref: (Bp, Hp)    final hidden state
    """
    # (1) Input projection hoisted off the serial chain: one MXU matmul for
    #     every timestep at once; bias broadcast-added once.
    pre = (jnp.dot(xs_ref[...], w_in_ref[...],
                   preferred_element_type=jnp.float32)
           + b_h_ref[...])                                # (S*Bp, Hp)

    # (2) Serial recurrence, fully unrolled at trace time (seq_len static).
    #     Only h @ W_hh + tanh remains on the critical dependence chain.
    w_hh = w_hh_ref[...]
    h = h0_ref[...]                                       # (Bp, Hp)
    for t in range(seq_len):
        pre_t = pre[t * bp:(t + 1) * bp, :]               # 8-sublane aligned
        h = jnp.tanh(pre_t + jnp.dot(h, w_hh,
                                     preferred_element_type=jnp.float32))
    h_out_ref[...] = h

    # (3) Output head once, on the final hidden only.
    logits = (jnp.dot(h, w_out_ref[...], preferred_element_type=jnp.float32)
              + b_out_ref[...])                           # (Bp, Lp)
    m = jnp.max(logits, axis=-1, keepdims=True)           # padded lanes ~ -1e30
    shifted = logits - m
    lse = jnp.log(jnp.sum(jnp.exp(shifted), axis=-1, keepdims=True))
    out_ref[...] = shifted - lse


def make_rnn_forward(params):
    """Pad / fuse the parameters ONCE and return a jitted sequence-forward fn.

    params: (w_in (A,H), b_in (H,), w_hh (H,H), b_hh (H,), w_out (H,L), b_out (L,))
            with weights stored (in, out) so the kernel computes `x @ W`.
    Returned fn: forward(xs (S,B,A), h0 (B,H)) -> (log_probs (B,L), hidden (B,H)).
    """
    w_in, b_in, w_hh, b_hh, w_out, b_out = params
    A, H = w_in.shape
    L = w_out.shape[1]

    # Lane-dense / sublane-dense padding (last dims -> x128).
    Ap = _round_up(A, 128)
    Hp = _round_up(H, 128)
    Lp = _round_up(L, 128)

    # One-time parameter prep (not on the per-call path).
    w_in_p = jnp.zeros((Ap, Hp), jnp.float32).at[:A, :H].set(w_in)
    w_hh_p = jnp.zeros((Hp, Hp), jnp.float32).at[:H, :H].set(w_hh)
    b_h_p = jnp.zeros((1, Hp), jnp.float32).at[0, :H].set(b_in + b_hh)
    w_out_p = jnp.zeros((Hp, Lp), jnp.float32).at[:H, :L].set(w_out)
    # Padded logit lanes get a huge negative bias so log_softmax ignores them.
    b_out_p = jnp.full((1, Lp), _NEG_INF, jnp.float32).at[0, :L].set(b_out)

    vmem = pl.BlockSpec(memory_space=pltpu.MemorySpace.VMEM)  # whole array in VMEM

    @jax.jit
    def forward(xs, h0):
        S, B, _ = xs.shape
        Bp = _round_up(B, 8)

        # Per-call padding: only the activations.
        xs_p = (jnp.zeros((S, Bp, Ap), jnp.float32)
                .at[:, :B, :A].set(xs)
                .reshape(S * Bp, Ap))                     # layout-preserving
        h0_p = jnp.zeros((Bp, Hp), jnp.float32).at[:B, :H].set(h0)

        out_p, h_p = pl.pallas_call(
            functools.partial(_rnn_fused_kernel, seq_len=S, bp=Bp),
            out_shape=(jax.ShapeDtypeStruct((Bp, Lp), jnp.float32),
                       jax.ShapeDtypeStruct((Bp, Hp), jnp.float32)),
            in_specs=[vmem] * 7,
            out_specs=(vmem, vmem),
        )(xs_p, h0_p, w_in_p, w_hh_p, b_h_p, w_out_p, b_out_p)

        return out_p[:B, :L], h_p[:B, :H]

    return forward


def init_params(key, n_alphabets, hidden_size, n_languages):
    """Deterministic synthetic parameters (PyTorch nn.Linear init, stored transposed)."""
    k = jax.random.split(key, 6)
    scale_in = 1.0 / jnp.sqrt(n_alphabets)
    scale_h = 1.0 / jnp.sqrt(hidden_size)
    # PyTorch Linear weight is (out, in); we store (in, out) for `x @ W`.
    w_in = jax.random.uniform(k[0], (n_alphabets, hidden_size), jnp.float32,
                              -scale_in, scale_in)
    b_in = jax.random.uniform(k[1], (hidden_size,), jnp.float32, -scale_in, scale_in)
    w_hh = jax.random.uniform(k[2], (hidden_size, hidden_size), jnp.float32,
                              -scale_h, scale_h)
    b_hh = jax.random.uniform(k[3], (hidden_size,), jnp.float32, -scale_h, scale_h)
    w_out = jax.random.uniform(k[4], (hidden_size, n_languages), jnp.float32,
                               -scale_h, scale_h)
    b_out = jax.random.uniform(k[5], (n_languages,), jnp.float32, -scale_h, scale_h)
    return (w_in, b_in, w_hh, b_hh, w_out, b_out)


def reference_sequence_forward(xs, h0, params):
    """Pure-JAX unrolled reference (mirrors the PyTorch train/eval loop)."""
    w_in, b_in, w_hh, b_hh, w_out, b_out = params
    h = h0
    out = None
    for t in range(xs.shape[0]):
        h = jnp.tanh(xs[t] @ w_in + b_in + h @ w_hh + b_hh)
        out = jax.nn.log_softmax(h @ w_out + b_out, axis=-1)
    return out, h


if __name__ == "__main__":
    # Small shapes consistent with the module: an RNN over one-hot-ish characters.
    BATCH = 2
    N_ALPHABETS = 26     # len(alphabets)
    HIDDEN = 32          # hidden_size
    N_LANGUAGES = 8      # len(languages)
    SEQ = 8              # character-sequence length (like train_model unroll)

    key = jax.random.PRNGKey(0)
    pkey, xkey = jax.random.split(key)
    params = init_params(pkey, N_ALPHABETS, HIDDEN, N_LANGUAGES)

    # Sequence of "characters": (SEQ, BATCH, N_ALPHABETS)
    xs = jax.random.normal(xkey, (SEQ, BATCH, N_ALPHABETS), dtype=jnp.float32)

    # init_hidden() returns zeros(hidden_size), broadcast over batch.
    h0 = jnp.zeros((BATCH, HIDDEN), dtype=jnp.float32)

    forward = make_rnn_forward(params)   # one-time param padding/fusion
    out, hidden = forward(xs, h0)
    out = jax.block_until_ready(out)
    hidden = jax.block_until_ready(hidden)

    out_ref, hidden_ref = reference_sequence_forward(xs, h0, params)

    assert out.shape == (BATCH, N_LANGUAGES)
    assert hidden.shape == (BATCH, HIDDEN)
    assert jnp.allclose(out, out_ref, atol=1e-5, rtol=1e-5)
    assert jnp.allclose(hidden, hidden_ref, atol=1e-5, rtol=1e-5)

    print("KERNEL_OK")
</pallas_src>

<mosaic_0001>
module attributes {stable_mosaic.version = 11 : i64} {
  func.func @_rnn_fused_kernel(%arg0: memref<64x128xf32, #tpu.memory_space<vmem>>, %arg1: memref<8x128xf32, #tpu.memory_space<vmem>>, %arg2: memref<128x128xf32, #tpu.memory_space<vmem>>, %arg3: memref<128x128xf32, #tpu.memory_space<vmem>>, %arg4: memref<1x128xf32, #tpu.memory_space<vmem>>, %arg5: memref<128x128xf32, #tpu.memory_space<vmem>>, %arg6: memref<1x128xf32, #tpu.memory_space<vmem>>, %arg7: memref<8x128xf32, #tpu.memory_space<vmem>>, %arg8: memref<8x128xf32, #tpu.memory_space<vmem>>) attributes {dimension_semantics = [], scalar_prefetch = 0 : i64, scratch_operands = 0 : i64, tpu.core_type = #tpu.core_type<tc>} {
    %c0 = arith.constant 0 : index
    %c0_0 = arith.constant 0 : index
    %0 = vector.load %arg0[%c0, %c0_0] : memref<64x128xf32, #tpu.memory_space<vmem>>, vector<64x128xf32>
    %c0_1 = arith.constant 0 : index
    %c0_2 = arith.constant 0 : index
    %1 = vector.load %arg2[%c0_1, %c0_2] : memref<128x128xf32, #tpu.memory_space<vmem>>, vector<128x128xf32>
    %cst = arith.constant dense<0.000000e+00> : vector<64x128xf32>
    %2 = tpu.matmul %0, %1, %cst {dimension_numbers = #tpu.dot_dimension_numbers<[1], [0], [0], [1], [0, 0, 1, 1], [], []>} : vector<64x128xf32>, vector<128x128xf32>, vector<64x128xf32> -> vector<64x128xf32>
    %c0_3 = arith.constant 0 : index
    %c0_4 = arith.constant 0 : index
    %3 = vector.load %arg4[%c0_3, %c0_4] : memref<1x128xf32, #tpu.memory_space<vmem>>, vector<1x128xf32>
    %4 = vector.broadcast %3 : vector<1x128xf32> to vector<64x128xf32>
    %5 = arith.addf %2, %4 : vector<64x128xf32>
    %c0_5 = arith.constant 0 : index
    %c0_6 = arith.constant 0 : index
    %6 = vector.load %arg3[%c0_5, %c0_6] : memref<128x128xf32, #tpu.memory_space<vmem>>, vector<128x128xf32>
    %c0_7 = arith.constant 0 : index
    %c0_8 = arith.constant 0 : index
    %7 = vector.load %arg1[%c0_7, %c0_8] : memref<8x128xf32, #tpu.memory_space<vmem>>, vector<8x128xf32>
    %8 = vector.extract_strided_slice %5 {offsets = [0, 0], sizes = [8, 128], strides = [1, 1]} : vector<64x128xf32> to vector<8x128xf32>
    %cst_9 = arith.constant dense<0.000000e+00> : vector<8x128xf32>
    %9 = tpu.matmul %7, %6, %cst_9 {dimension_numbers = #tpu.dot_dimension_numbers<[1], [0], [0], [1], [0, 0, 1, 1], [], []>} : vector<8x128xf32>, vector<128x128xf32>, vector<8x128xf32> -> vector<8x128xf32>
    %10 = arith.addf %8, %9 : vector<8x128xf32>
    %11 = math.tanh %10 : vector<8x128xf32>
    %12 = vector.extract_strided_slice %5 {offsets = [8, 0], sizes = [8, 128], strides = [1, 1]} : vector<64x128xf32> to vector<8x128xf32>
    %cst_10 = arith.constant dense<0.000000e+00> : vector<8x128xf32>
    %13 = tpu.matmul %11, %6, %cst_10 {dimension_numbers = #tpu.dot_dimension_numbers<[1], [0], [0], [1], [0, 0, 1, 1], [], []>} : vector<8x128xf32>, vector<128x128xf32>, vector<8x128xf32> -> vector<8x128xf32>
    %14 = arith.addf %12, %13 : vector<8x128xf32>
    %15 = math.tanh %14 : vector<8x128xf32>
    %16 = vector.extract_strided_slice %5 {offsets = [16, 0], sizes = [8, 128], strides = [1, 1]} : vector<64x128xf32> to vector<8x128xf32>
    %cst_11 = arith.constant dense<0.000000e+00> : vector<8x128xf32>
    %17 = tpu.matmul %15, %6, %cst_11 {dimension_numbers = #tpu.dot_dimension_numbers<[1], [0], [0], [1], [0, 0, 1, 1], [], []>} : vector<8x128xf32>, vector<128x128xf32>, vector<8x128xf32> -> vector<8x128xf32>
    %18 = arith.addf %16, %17 : vector<8x128xf32>
    %19 = math.tanh %18 : vector<8x128xf32>
    %20 = vector.extract_strided_slice %5 {offsets = [24, 0], sizes = [8, 128], strides = [1, 1]} : vector<64x128xf32> to vector<8x128xf32>
    %cst_12 = arith.constant dense<0.000000e+00> : vector<8x128xf32>
    %21 = tpu.matmul %19, %6, %cst_12 {dimension_numbers = #tpu.dot_dimension_numbers<[1], [0], [0], [1], [0, 0, 1, 1], [], []>} : vector<8x128xf32>, vector<128x128xf32>, vector<8x128xf32> -> vector<8x128xf32>
    %22 = arith.addf %20, %21 : vector<8x128xf32>
    %23 = math.tanh %22 : vector<8x128xf32>
    %24 = vector.extract_strided_slice %5 {offsets = [32, 0], sizes = [8, 128], strides = [1, 1]} : vector<64x128xf32> to vector<8x128xf32>
    %cst_13 = arith.constant dense<0.000000e+00> : vector<8x128xf32>
    %25 = tpu.matmul %23, %6, %cst_13 {dimension_numbers = #tpu.dot_dimension_numbers<[1], [0], [0], [1], [0, 0, 1, 1], [], []>} : vector<8x128xf32>, vector<128x128xf32>, vector<8x128xf32> -> vector<8x128xf32>
    %26 = arith.addf %24, %25 : vector<8x128xf32>
    %27 = math.tanh %26 : vector<8x128xf32>
    %28 = vector.extract_strided_slice %5 {offsets = [40, 0], sizes = [8, 128], strides = [1, 1]} : vector<64x128xf32> to vector<8x128xf32>
    %cst_14 = arith.constant dense<0.000000e+00> : vector<8x128xf32>
    %29 = tpu.matmul %27, %6, %cst_14 {dimension_numbers = #tpu.dot_dimension_numbers<[1], [0], [0], [1], [0, 0, 1, 1], [], []>} : vector<8x128xf32>, vector<128x128xf32>, vector<8x128xf32> -> vector<8x128xf32>
    %30 = arith.addf %28, %29 : vector<8x128xf32>
    %31 = math.tanh %30 : vector<8x128xf32>
    %32 = vector.extract_strided_slice %5 {offsets = [48, 0], sizes = [8, 128], strides = [1, 1]} : vector<64x128xf32> to vector<8x128xf32>
    %cst_15 = arith.constant dense<0.000000e+00> : vector<8x128xf32>
    %33 = tpu.matmul %31, %6, %cst_15 {dimension_numbers = #tpu.dot_dimension_numbers<[1], [0], [0], [1], [0, 0, 1, 1], [], []>} : vector<8x128xf32>, vector<128x128xf32>, vector<8x128xf32> -> vector<8x128xf32>
    %34 = arith.addf %32, %33 : vector<8x128xf32>
    %35 = math.tanh %34 : vector<8x128xf32>
    %36 = vector.extract_strided_slice %5 {offsets = [56, 0], sizes = [8, 128], strides = [1, 1]} : vector<64x128xf32> to vector<8x128xf32>
    %cst_16 = arith.constant dense<0.000000e+00> : vector<8x128xf32>
    %37 = tpu.matmul %35, %6, %cst_16 {dimension_numbers = #tpu.dot_dimension_numbers<[1], [0], [0], [1], [0, 0, 1, 1], [], []>} : vector<8x128xf32>, vector<128x128xf32>, vector<8x128xf32> -> vector<8x128xf32>
    %38 = arith.addf %36, %37 : vector<8x128xf32>
    %39 = math.tanh %38 : vector<8x128xf32>
    %c0_17 = arith.constant 0 : index
    %c0_18 = arith.constant 0 : index
    %40 = vector.load %arg8[%c0_17, %c0_18] : memref<8x128xf32, #tpu.memory_space<vmem>>, vector<8x128xf32>
    tpu.vector_store %arg8[%c0_17, %c0_18], %39 {strides = array<i32>} : memref<8x128xf32, #tpu.memory_space<vmem>>, vector<8x128xf32>,
    %c0_19 = arith.constant 0 : index
    %c0_20 = arith.constant 0 : index
    %41 = vector.load %arg5[%c0_19, %c0_20] : memref<128x128xf32, #tpu.memory_space<vmem>>, vector<128x128xf32>
    %cst_21 = arith.constant dense<0.000000e+00> : vector<8x128xf32>
    %42 = tpu.matmul %39, %41, %cst_21 {dimension_numbers = #tpu.dot_dimension_numbers<[1], [0], [0], [1], [0, 0, 1, 1], [], []>} : vector<8x128xf32>, vector<128x128xf32>, vector<8x128xf32> -> vector<8x128xf32>
    %c0_22 = arith.constant 0 : index
    %c0_23 = arith.constant 0 : index
    %43 = vector.load %arg6[%c0_22, %c0_23] : memref<1x128xf32, #tpu.memory_space<vmem>>, vector<1x128xf32>
    %44 = vector.broadcast %43 : vector<1x128xf32> to vector<8x128xf32>
    %45 = arith.addf %42, %44 : vector<8x128xf32>
    %cst_24 = arith.constant dense<0xFF800000> : vector<8xf32>
    %46 = vector.multi_reduction <maximumf>, %45, %cst_24 [1] : vector<8x128xf32> to vector<8xf32>
    %47 = vector.shape_cast %46 : vector<8xf32> to vector<8x1xf32>
    %48 = vector.broadcast %47 : vector<8x1xf32> to vector<8x128xf32>
    %49 = arith.subf %45, %48 : vector<8x128xf32>
    %50 = math.exp %49 : vector<8x128xf32>
    %cst_25 = arith.constant dense<0.000000e+00> : vector<8xf32>
    %51 = vector.multi_reduction <add>, %50, %cst_25 [1] : vector<8x128xf32> to vector<8xf32>
    %52 = vector.shape_cast %51 : vector<8xf32> to vector<8x1xf32>
    %53 = math.log %52 : vector<8x1xf32>
    %54 = vector.broadcast %53 : vector<8x1xf32> to vector<8x128xf32>
    %55 = arith.subf %49, %54 : vector<8x128xf32>
    %c0_26 = arith.constant 0 : index
    %c0_27 = arith.constant 0 : index
    %56 = vector.load %arg7[%c0_26, %c0_27] : memref<8x128xf32, #tpu.memory_space<vmem>>, vector<8x128xf32>
    tpu.vector_store %arg7[%c0_26, %c0_27], %55 {strides = array<i32>} : memref<8x128xf32, #tpu.memory_space<vmem>>, vector<8x128xf32>,
    return
  }
}

</mosaic_0001>

<bundles_post_ra>
// kernel: forward.1
= control target key start
LH: loop header
LB: loop body
LE: loop exit
PB: predicated region body
PF: predicated region fallthrough
CT: control target
= control target key end

     0   :  { %14 = vsyncpa [#allocation3], 0  ;;  %s1989_s0 = inlined_call_operand.vmem [shape: f32[64,128], index: 0, kind: input, shape index: {}]   ;;  %s1990_s1 = inlined_call_operand.vmem [shape: f32[8,128], index: 1, kind: input, shape index: {}]   ;;  %s1991_s2 = inlined_call_operand.hbm [shape: f32[128,128], index: 2, kind: input, shape index: {}]   ;;  %s1992_s3 = inlined_call_operand.hbm [shape: f32[128,128], index: 3, kind: input, shape index: {}]   ;;  %s1993_s4 = inlined_call_operand.vmem [shape: f32[1,128], index: 4, kind: input, shape index: {}]   ;;  %s1994_s5 = inlined_call_operand.hbm [shape: f32[128,128], index: 5, kind: input, shape index: {}]   ;;  %s1995_s6 = inlined_call_operand.vmem [shape: f32[1,128], index: 6, kind: input, shape index: {}]   ;;  %s1996_s7 = inlined_call_operand.vmem [shape: f32[8,128], index: 7, kind: output, shape index: {0}]   ;;  %s1997_s8 = inlined_call_operand.vmem [shape: f32[8,128], index: 8, kind: output, shape index: {1}]  }
   0x1   :  { %15 = vsyncpa [#allocation5], 0  ;;  %s1542_s27 = smov [#allocation4]   ;;  %s1543_s29 = smov [#allocation2]  }
   0x2   :  { %s37_s28 = sshll.u32 %s1542_s27, 4  ;;  %s25_s30 = sshll.u32 %s1543_s29, 4  ;;  %s38_s28 = int_to_ptr.vmem [resolvable:$true] %s37_s28  ;;  %s26_s30 = int_to_ptr.vmem [resolvable:$true] %s25_s30 }
   0x3   :  { %s1486_s9 = scalar_lea.vmem %s38_s28, 2048  ;;  %p1491_p1 = scmp.lt.s32.totalorder %s38_s28, %s38_s28 }
   0x4   :  { %p1487_p0 = scmp.ne.s32.totalorder %s38_s28, %s1486_s9  ;;  %p1492_p2 = scmp.lt.s32.totalorder %s1486_s9, %s1486_s9 }
   0x6   :  { %p1493_p3 = por %p1492_p2, %p1491_p1 }
   0x8   :  { %p1494_p4 = pnand %p1493_p3, %p1487_p0 }
   0xa   :  { %1497 = shalt.err (!%p1494_p4)
}
   0xb   :  { %s1544_s10 = smov 128   ;;  %s1545_s11 = smov 8  }
   0xc   :  { %43 = dma.hbm_to_vmem [thread:$0]  %s1992_s3, 2048, %s38_s28, [#allocation5], %s1544_s10, %s1544_s10, %s1545_s11  }
   0xd   :  { %s1506_s14 = scalar_lea.vmem %s26_s30, 2048  ;;  %p1511_p6 = scmp.lt.s32.totalorder %s26_s30, %s26_s30 }
   0xe   :  { %p1507_p5 = scmp.ne.s32.totalorder %s26_s30, %s1506_s14  ;;  %p1512_p7 = scmp.lt.s32.totalorder %s1506_s14, %s1506_s14 }
  0x10   :  { %p1513_p8 = por %p1512_p7, %p1511_p6 }
  0x12   :  { %p1514_p9 = pnand %p1513_p8, %p1507_p5 }
  0x14   :  { %1517 = shalt.err (!%p1514_p9)
}
  0x15   :  { %31 = dma.hbm_to_vmem [thread:$0]  %s1991_s2, 2048, %s26_s30, [#allocation3], %s1544_s10, %s1544_s10, %s1545_s11  }
  0x16   :  { %s1546_s17 = smov [#allocation6]  }
  0x17   :  { %s51_s18 = sshll.u32 %s1546_s17, 4  ;;  %s52_s18 = int_to_ptr.vmem [resolvable:$true] %s51_s18 }
  0x18   :  { %s1526_s19 = scalar_lea.vmem %s52_s18, 2048  ;;  %p1531_p11 = scmp.lt.s32.totalorder %s52_s18, %s52_s18 }
  0x19   :  { %p1527_p10 = scmp.ne.s32.totalorder %s52_s18, %s1526_s19  ;;  %p1532_p12 = scmp.lt.s32.totalorder %s1526_s19, %s1526_s19 }
  0x1b   :  { %p1533_p13 = por %p1532_p12, %p1531_p11 }
  0x1d   :  { %p1534_p0 = pnand %p1533_p13, %p1527_p10 }
  0x1f   :  { %1537 = shalt.err (!%p1534_p0)
}
  0x20   :  { %57 = dma.hbm_to_vmem [thread:$0]  %s1994_s5, 2048, %s52_s18, [#allocation5], %s1544_s10, %s1544_s10, %s1545_s11  }
  0x21   :  { %1538 = dma.done.wait [#allocation3], 2048  }
  0x22   :  { %1539 = vsyncadd [#allocation3], 4294965248 }
  0x23   :  { %1540 = dma.done.wait [#allocation5], 4096  }
  0x24   :  { %1541 = vsyncadd [#allocation5], 4294963200  ;;  %v1547_v0 = vmov 0.0   ;;  %vm1548_vm0 = vmmov 0   ;;  %v92_v1 = vld [vmem:[#allocation2 + $0x78] sm:$0xff]  ;;  %v91_v2 = vld [vmem:[#allocation2 + $0x70] sm:$0xff] }
  0x25   :  { %1136 = vmatprep.subr.mxu1 %v1547_v0  ;;  %1168 = vmatprep.mubr.msk.f32.mxu1 %vm1548_vm0, %v1547_v0  ;;  %v1606_v3 = vld [vmem:[#allocation4 + $0x78] sm:$0xff]  ;;  %v1609_v4 = vld [vmem:[#allocation4 + $0x70] sm:$0xff]  ;;  %v90_v5 = vld [vmem:[#allocation2 + $0x68] sm:$0xff] }
  0x26   :  { %1092 = vmatprep.subr.mxu0 %v92_v1  ;;  %1137 = vmatpush3.msra.mxu1 %v1606_v3  ;;  %v1612_v6 = vld [vmem:[#allocation4 + $0x68] sm:$0xff]  ;;  %v89_v7 = vld [vmem:[#allocation2 + $0x60] sm:$0xff]  ;;  %v88_v9 = vld [vmem:[#allocation2 + $0x58] sm:$0xff] }
  0x27   :  { %1093 = vmatpush3.msra.mxu0 %v92_v1  ;;  %1138 = vmatprep.subr.mxu1 %v1547_v0  ;;  %v1616_v8 = vld [vmem:[#allocation4 + $0x60] sm:$0xff]  ;;  %v1620_v10 = vld [vmem:[#allocation4 + $0x58] sm:$0xff]  ;;  %v87_v11 = vld [vmem:[#allocation2 + $0x50] sm:$0xff] }
  0x28   :  { %1094 = vmatprep.subr.mxu0 %v91_v2  ;;  %1139 = vmatpush3.msra.mxu1 %v1609_v4  ;;  %v1624_v12 = vld [vmem:[#allocation4 + $0x50] sm:$0xff]  ;;  %v86_v13 = vld [vmem:[#allocation2 + $0x48] sm:$0xff]  ;;  %v85_v15 = vld [vmem:[#allocation2 + $0x40] sm:$0xff] }
  0x29   :  { %1095 = vmatpush3.msra.mxu0 %v91_v2  ;;  %1140 = vmatprep.subr.mxu1 %v1547_v0  ;;  %v1628_v14 = vld [vmem:[#allocation4 + $0x48] sm:$0xff]  ;;  %v1632_v16 = vld [vmem:[#allocation4 + $0x40] sm:$0xff]  ;;  %v84_v17 = vld [vmem:[#allocation2 + $0x38] sm:$0xff] }
  0x2a   :  { %1096 = vmatprep.subr.mxu0 %v90_v5  ;;  %1141 = vmatpush3.msra.mxu1 %v1612_v6  ;;  %v1636_v18 = vld [vmem:[#allocation4 + $0x38] sm:$0xff]  ;;  %v83_v19 = vld [vmem:[#allocation2 + $0x30] sm:$0xff]  ;;  %v82_v21 = vld [vmem:[#allocation2 + $0x28] sm:$0xff] }
  0x2b   :  { %1097 = vmatpush3.msra.mxu0 %v90_v5  ;;  %1142 = vmatprep.subr.mxu1 %v1547_v0  ;;  %v1640_v20 = vld [vmem:[#allocation4 + $0x30] sm:$0xff]  ;;  %v1644_v22 = vld [vmem:[#allocation4 + $0x28] sm:$0xff]  ;;  %v81_v23 = vld [vmem:[#allocation2 + $0x20] sm:$0xff] }
  0x2c   :  { %1098 = vmatprep.subr.mxu0 %v89_v7  ;;  %1143 = vmatpush3.msra.mxu1 %v1616_v8  ;;  %v1648_v24 = vld [vmem:[#allocation4 + $0x20] sm:$0xff]  ;;  %v80_v25 = vld [vmem:[#allocation2 + $0x18] sm:$0xff]  ;;  %v79_v27 = vld [vmem:[#allocation2 + $0x10] sm:$0xff] }
  0x2d   :  { %1099 = vmatpush3.msra.mxu0 %v89_v7  ;;  %1144 = vmatprep.subr.mxu1 %v1547_v0  ;;  %v1652_v26 = vld [vmem:[#allocation4 + $0x18] sm:$0xff]  ;;  %v1656_v28 = vld [vmem:[#allocation4 + $0x10] sm:$0xff]  ;;  %v78_v29 = vld [vmem:[#allocation2 + $0x8] sm:$0xff] }
  0x2e   :  { %1100 = vmatprep.subr.mxu0 %v88_v9  ;;  %1145 = vmatpush3.msra.mxu1 %v1620_v10  ;;  %v69_v30 = vld [vmem:[%s1989_s0] sm:$0xff]  ;;  %v1664_v31 = vld [vmem:[#allocation4 + $0x8] sm:$0xff]  ;;  %v71_v36 = vld [vmem:[%s1989_s0 + $0x10] sm:$0xff] }
  0x2f   :  { %1101 = vmatpush3.msra.mxu0 %v88_v9  ;;  %1146 = vmatprep.subr.mxu1 %v1547_v0  ;;  %v77_v32 = vld [vmem:[#allocation2] sm:$0xff]  ;;  %v70_v34 = vld [vmem:[%s1989_s0 + $0x8] sm:$0xff]  ;;  %v72_v37 = vld [vmem:[%s1989_s0 + $0x18] sm:$0xff] }
  0x30   :  { %1102 = vmatprep.subr.mxu0 %v87_v11  ;;  %1147 = vmatpush3.msra.mxu1 %v1624_v12  ;;  %v1667_v33 = vld [vmem:[#allocation4] sm:$0xff]  ;;  %v74_v39 = vld [vmem:[%s1989_s0 + $0x28] sm:$0xff]  ;;  %v75_v40 = vld [vmem:[%s1989_s0 + $0x30] sm:$0xff] }
  0x31   :  { %1103 = vmatpush3.msra.mxu0 %v87_v11  ;;  %1148 = vmatprep.subr.mxu1 %v1547_v0  ;;  %v221_v35 = vld [vmem:[%s1990_s1] sm:$0xff]  ;;  %v76_v41 = vld [vmem:[%s1989_s0 + $0x38] sm:$0xff] }
  0x32   :  { %1104 = vmatprep.subr.mxu0 %v86_v13  ;;  %1149 = vmatpush3.msra.mxu1 %v1628_v14  ;;  %v73_v38 = vld [vmem:[%s1989_s0 + $0x20] sm:$0xff] }
  0x33   :  { %1105 = vmatpush3.msra.mxu0 %v86_v13  ;;  %1150 = vmatprep.subr.mxu1 %v1547_v0  ;;  %v1769_v44 = vld [vmem:[%s1993_s4] ss:$0 sm:$0xff] }
  0x34   :  { %1106 = vmatprep.subr.mxu0 %v85_v15  ;;  %1151 = vmatpush3.msra.mxu1 %v1632_v16 }
  0x35   :  { %1107 = vmatpush3.msra.mxu0 %v85_v15  ;;  %1152 = vmatprep.subr.mxu1 %v1547_v0 }
  0x36   :  { %1108 = vmatprep.subr.mxu0 %v84_v17  ;;  %1153 = vmatpush3.msra.mxu1 %v1636_v18 }
  0x37   :  { %1109 = vmatpush3.msra.mxu0 %v84_v17  ;;  %1154 = vmatprep.subr.mxu1 %v1547_v0 }
  0x38   :  { %1110 = vmatprep.subr.mxu0 %v83_v19  ;;  %1155 = vmatpush3.msra.mxu1 %v1640_v20 }
  0x39   :  { %1111 = vmatpush3.msra.mxu0 %v83_v19  ;;  %1156 = vmatprep.subr.mxu1 %v1547_v0 }
  0x3a   :  { %1112 = vmatprep.subr.mxu0 %v82_v21  ;;  %1157 = vmatpush3.msra.mxu1 %v1644_v22 }
  0x3b   :  { %1113 = vmatpush3.msra.mxu0 %v82_v21  ;;  %1158 = vmatprep.subr.mxu1 %v1547_v0 }
  0x3c   :  { %1114 = vmatprep.subr.mxu0 %v81_v23  ;;  %1159 = vmatpush3.msra.mxu1 %v1648_v24 }
  0x3d   :  { %1115 = vmatpush3.msra.mxu0 %v81_v23  ;;  %1160 = vmatprep.subr.mxu1 %v1547_v0 }
  0x3e   :  { %1116 = vmatprep.subr.mxu0 %v80_v25  ;;  %1161 = vmatpush3.msra.mxu1 %v1652_v26 }
  0x3f   :  { %1117 = vmatpush3.msra.mxu0 %v80_v25  ;;  %1162 = vmatprep.subr.mxu1 %v1547_v0 }
  0x40   :  { %1118 = vmatprep.subr.mxu0 %v79_v27  ;;  %1163 = vmatpush3.msra.mxu1 %v1656_v28 }
  0x41   :  { %1119 = vmatpush3.msra.mxu0 %v79_v27  ;;  %1164 = vmatprep.subr.mxu1 %v1547_v0 }
  0x42   :  { %1120 = vmatprep.subr.mxu0 %v78_v29  ;;  %1124 = vmatprep.mubr.f32.mxu0 %v69_v30  ;;  %v807_v30 = vld [vmem:[#allocation6 + $0x40] sm:$0xff] }
  0x43   :  { %1121 = vmatpush3.msra.mxu0 %v78_v29  ;;  %1165 = vmatpush3.msra.mxu1 %v1664_v31 }
  0x44   :  { %1122 = vmatprep.subr.mxu0 %v77_v32  ;;  %1166 = vmatprep.subr.mxu1 %v1547_v0 }
  0x45   :  { %1123 = vmatpush3.msra.mxu0 %v77_v32  ;;  %1167 = vmatpush3.msra.mxu1 %v1667_v33  ;;  %v805_v32 = vld [vmem:[#allocation6 + $0x30] sm:$0xff] }
  0x46   :  { %1125 = vmatmul.mubr.f32.vlgmr.msra.gmra.mxu0 %v70_v34  ;;  %1169 = vmatmul.mubr.f32.vlgmr.msra.gmra.mxu1 %v221_v35  ;;  %v803_v34 = vld [vmem:[#allocation6 + $0x20] sm:$0xff]  ;;  %v802_v35 = vld [vmem:[#allocation6 + $0x18] sm:$0xff] }
  0x47   :  { %1171 = vmatprep.subr.mxu0 %v1547_v0  ;;  %1206 = vmatprep.subr.mxu1 %v1547_v0 }
  0x48   :  { %1172 = vmatpush3.msra.mxu0 %v1606_v3  ;;  %1207 = vmatpush3.msra.mxu1 %v1606_v3 }
  0x49   :  { %1173 = vmatprep.subr.mxu0 %v1547_v0  ;;  %1208 = vmatprep.subr.mxu1 %v1547_v0 }
  0x4a   :  { %1174 = vmatpush3.msra.mxu0 %v1609_v4  ;;  %1209 = vmatpush3.msra.mxu1 %v1609_v4 }
  0x4b   :  { %1175 = vmatprep.subr.mxu0 %v1547_v0  ;;  %1210 = vmatprep.subr.mxu1 %v1547_v0 }
  0x4c   :  { %1176 = vmatpush3.msra.mxu0 %v1612_v6  ;;  %1211 = vmatpush3.msra.mxu1 %v1612_v6 }
  0x4d   :  { %1177 = vmatprep.subr.mxu0 %v1547_v0  ;;  %1212 = vmatprep.subr.mxu1 %v1547_v0 }
  0x4e   :  { %1178 = vmatpush3.msra.mxu0 %v1616_v8  ;;  %1213 = vmatpush3.msra.mxu1 %v1616_v8 }
  0x4f   :  { %1179 = vmatprep.subr.mxu0 %v1547_v0  ;;  %1214 = vmatprep.subr.mxu1 %v1547_v0 }
  0x50   :  { %1180 = vmatpush3.msra.mxu0 %v1620_v10  ;;  %1215 = vmatpush3.msra.mxu1 %v1620_v10 }
  0x51   :  { %1181 = vmatprep.subr.mxu0 %v1547_v0  ;;  %1216 = vmatprep.subr.mxu1 %v1547_v0 }
  0x52   :  { %1182 = vmatpush3.msra.mxu0 %v1624_v12  ;;  %1217 = vmatpush3.msra.mxu1 %v1624_v12 }
  0x53   :  { %1183 = vmatprep.subr.mxu0 %v1547_v0  ;;  %1218 = vmatprep.subr.mxu1 %v1547_v0 }
  0x54   :  { %1184 = vmatpush3.msra.mxu0 %v1628_v14  ;;  %1219 = vmatpush3.msra.mxu1 %v1628_v14 }
  0x55   :  { %1185 = vmatprep.subr.mxu0 %v1547_v0  ;;  %1220 = vmatprep.subr.mxu1 %v1547_v0 }
  0x56   :  { %1186 = vmatpush3.msra.mxu0 %v1632_v16  ;;  %1221 = vmatpush3.msra.mxu1 %v1632_v16 }
  0x57   :  { %1187 = vmatprep.subr.mxu0 %v1547_v0  ;;  %1222 = vmatprep.subr.mxu1 %v1547_v0 }
  0x58   :  { %1188 = vmatpush3.msra.mxu0 %v1636_v18  ;;  %1223 = vmatpush3.msra.mxu1 %v1636_v18 }
  0x59   :  { %1189 = vmatprep.subr.mxu0 %v1547_v0  ;;  %1224 = vmatprep.subr.mxu1 %v1547_v0 }
  0x5a   :  { %1190 = vmatpush3.msra.mxu0 %v1640_v20  ;;  %1225 = vmatpush3.msra.mxu1 %v1640_v20 }
  0x5b   :  { %1191 = vmatprep.subr.mxu0 %v1547_v0  ;;  %1226 = vmatprep.subr.mxu1 %v1547_v0 }
  0x5c   :  { %1192 = vmatpush3.msra.mxu0 %v1644_v22  ;;  %1227 = vmatpush3.msra.mxu1 %v1644_v22 }
  0x5d   :  { %1193 = vmatprep.subr.mxu0 %v1547_v0  ;;  %1228 = vmatprep.subr.mxu1 %v1547_v0 }
  0x5e   :  { %1194 = vmatpush3.msra.mxu0 %v1648_v24  ;;  %1229 = vmatpush3.msra.mxu1 %v1648_v24 }
  0x5f   :  { %1195 = vmatprep.subr.mxu0 %v1547_v0  ;;  %1230 = vmatprep.subr.mxu1 %v1547_v0 }
  0x60   :  { %1196 = vmatpush3.msra.mxu0 %v1652_v26  ;;  %1231 = vmatpush3.msra.mxu1 %v1652_v26 }
  0x61   :  { %1197 = vmatprep.subr.mxu0 %v1547_v0  ;;  %1232 = vmatprep.subr.mxu1 %v1547_v0 }
  0x62   :  { %1198 = vmatpush3.msra.mxu0 %v1656_v28  ;;  %1233 = vmatpush3.msra.mxu1 %v1656_v28 }
  0x63   :  { %1199 = vmatprep.subr.mxu0 %v1547_v0  ;;  %1234 = vmatprep.subr.mxu1 %v1547_v0 }
  0x64   :  { %1200 = vmatpush3.msra.mxu0 %v1664_v31  ;;  %1235 = vmatpush3.msra.mxu1 %v1664_v31 }
  0x65   :  { %1201 = vmatprep.subr.mxu0 %v1547_v0  ;;  %1236 = vmatprep.subr.mxu1 %v1547_v0 }
  0x66   :  { %1202 = vmatpush3.msra.mxu0 %v1667_v33  ;;  %1237 = vmatpush3.msra.mxu1 %v1667_v33 }
  0x67   :  { %1238 = vmatprep.mubr.msk.f32.mxu1 %vm1548_vm0, %v1547_v0  ;;  %1241 = vmatprep.subr.mxu0 %v1547_v0 }
  0x68   :  { %1276 = vmatprep.subr.mxu1 %v1547_v0  ;;  %1127 = vmatprep.mubr.f32.mxu0 %v71_v36  ;;  %v801_v36 = vld [vmem:[#allocation6 + $0x10] sm:$0xff] }
  0x69   :  { %1128 = vmatmul.mubr.f32.gmra.mxu0 %v72_v37  ;;  %v800_v37 = vld [vmem:[#allocation6 + $0x8] sm:$0xff] }
  0x6a   :  { %1130 = vmatprep.mubr.f32.mxu0 %v73_v38  ;;  %v799_v38 = vld [vmem:[#allocation6] sm:$0xff] }
  0x6d   :  { %1131 = vmatmul.mubr.f32.gmra.mxu0 %v74_v39 }
  0x6e   :  { %1133 = vmatprep.mubr.f32.mxu0 %v75_v40 }
  0x71   :  { %1134 = vmatmul.mubr.f32.gmra.mxu0 %v76_v41 }
  0x72   :  { %1203 = vmatprep.mubr.msk.f32.mxu0 %vm1548_vm0, %v1547_v0 }
 0x106   :  { %v1126_v42 = vpop.f32.mrf.mxu0  ;;  %v288_v43 = vpop.f32.mrf.mxu1 }
 0x107   :  { %v172_v56 = vadd.f32 %v1126_v42, %v1769_v44 }
 0x108   :  { %v166_v45 = vpop.f32.mrf.mxu0  ;;  %v1170_v46 = vpop.f32.mrf.mxu1 }
 0x109   :  { %v167_v47 = vadd.f32 %v1769_v44, %v166_v45  ;;  %v914_v45 = vld [vmem:[%s1995_s6] ss:$0 sm:$0xff] }
 0x10b   :  { %v292_v48 = vadd.f32 %v288_v43, %v167_v47 }
 0x10d   :  { %1458 = vtanh.f32 %v292_v48 }
 0x11a   :  { %v1459_v49 = vpop.eup %1458 }
 0x11b   :  { %1204 = vmatmul.mubr.f32.vlgmr.msra.gmra.mxu0 %v1459_v49 }
 0x11c   :  { %1242 = vmatpush3.msra.mxu0 %v1606_v3  ;;  %1273 = vmatprep.mubr.msk.f32.mxu0 %vm1548_vm0, %v1547_v0 }
 0x11d   :  { %1243 = vmatprep.subr.mxu0 %v1547_v0 }
 0x11e   :  { %1244 = vmatpush3.msra.mxu0 %v1609_v4 }
 0x11f   :  { %1245 = vmatprep.subr.mxu0 %v1547_v0 }
 0x120   :  { %1246 = vmatpush3.msra.mxu0 %v1612_v6 }
 0x121   :  { %1247 = vmatprep.subr.mxu0 %v1547_v0 }
 0x122   :  { %1248 = vmatpush3.msra.mxu0 %v1616_v8 }
 0x123   :  { %1249 = vmatprep.subr.mxu0 %v1547_v0 }
 0x124   :  { %1250 = vmatpush3.msra.mxu0 %v1620_v10 }
 0x125   :  { %1251 = vmatprep.subr.mxu0 %v1547_v0 }
 0x126   :  { %1252 = vmatpush3.msra.mxu0 %v1624_v12 }
 0x127   :  { %1253 = vmatprep.subr.mxu0 %v1547_v0 }
 0x128   :  { %1254 = vmatpush3.msra.mxu0 %v1628_v14 }
 0x129   :  { %1255 = vmatprep.subr.mxu0 %v1547_v0  ;;  %v1806_v50 = vpop.f32.mrf.mxu0 }
 0x12a   :  { %1256 = vmatpush3.msra.mxu0 %v1632_v16  ;;  %v182_v5 = vadd.f32 %v1806_v50, %v1769_v44 }
 0x12b   :  { %1257 = vmatprep.subr.mxu0 %v1547_v0  ;;  %v176_v51 = vpop.f32.mrf.mxu0 }
 0x12c   :  { %1258 = vmatpush3.msra.mxu0 %v1636_v18  ;;  %v177_v61 = vadd.f32 %v1769_v44, %v176_v51 }
 0x12d   :  { %1259 = vmatprep.subr.mxu0 %v1547_v0  ;;  %v1808_v52 = vpop.f32.mrf.mxu0 }
 0x12e   :  { %1260 = vmatpush3.msra.mxu0 %v1640_v20 }
 0x12f   :  { %1261 = vmatprep.subr.mxu0 %v1547_v0  ;;  %v1810_v53 = vpop.f32.mrf.mxu0 }
 0x130   :  { %1262 = vmatpush3.msra.mxu0 %v1644_v22  ;;  %v187_v15 = vadd.f32 %v1769_v44, %v1810_v53 }
 0x131   :  { %1263 = vmatprep.subr.mxu0 %v1547_v0  ;;  %v1812_v54 = vpop.f32.mrf.mxu0 }
 0x132   :  { %1264 = vmatpush3.msra.mxu0 %v1648_v24  ;;  %v202_v39 = vadd.f32 %v1812_v54, %v1769_v44 }
 0x133   :  { %1265 = vmatprep.subr.mxu0 %v1547_v0  ;;  %v1814_v55 = vpop.f32.mrf.mxu0 }
 0x134   :  { %1266 = vmatpush3.msra.mxu0 %v1652_v26  ;;  %v197_v25 = vadd.f32 %v1769_v44, %v1814_v55 }
 0x135   :  { %1267 = vmatprep.subr.mxu0 %v1547_v0 }
 0x136   :  { %1268 = vmatpush3.msra.mxu0 %v1656_v28 }
 0x137   :  { %1269 = vmatprep.subr.mxu0 %v1547_v0 }
 0x138   :  { %1270 = vmatpush3.msra.mxu0 %v1664_v31 }
 0x139   :  { %1271 = vmatprep.subr.mxu0 %v1547_v0 }
 0x13a   :  { %1272 = vmatpush3.msra.mxu0 %v1667_v33 }
 0x13b   :  { %1311 = vmatprep.subr.mxu0 %v1547_v0 }
 0x1db   :  { %v360_v57 = vpop.f32.mrf.mxu0 }
 0x1dc   :  { %v364_v58 = vadd.f32 %v360_v57, %v172_v56 }
 0x1dd   :  { %v1205_v59 = vpop.f32.mrf.mxu0 }
 0x1de   :  { %1460 = vtanh.f32 %v364_v58 }
 0x1eb   :  { %v1461_v60 = vpop.eup %1460 }
 0x1ec   :  { %1239 = vmatmul.mubr.f32.vlgmr.msra.gmra.mxu1 %v1461_v60 }
 0x1ed   :  { %1277 = vmatpush3.msra.mxu1 %v1606_v3  ;;  %1308 = vmatprep.mubr.msk.f32.mxu1 %vm1548_vm0, %v1547_v0 }
 0x1ee   :  { %1278 = vmatprep.subr.mxu1 %v1547_v0 }
 0x1ef   :  { %1279 = vmatpush3.msra.mxu1 %v1609_v4 }
 0x1f0   :  { %1280 = vmatprep.subr.mxu1 %v1547_v0 }
 0x1f1   :  { %1281 = vmatpush3.msra.mxu1 %v1612_v6 }
 0x1f2   :  { %1282 = vmatprep.subr.mxu1 %v1547_v0 }
 0x1f3   :  { %1283 = vmatpush3.msra.mxu1 %v1616_v8 }
 0x1f4   :  { %1284 = vmatprep.subr.mxu1 %v1547_v0 }
 0x1f5   :  { %1285 = vmatpush3.msra.mxu1 %v1620_v10 }
 0x1f6   :  { %1286 = vmatprep.subr.mxu1 %v1547_v0 }
 0x1f7   :  { %1287 = vmatpush3.msra.mxu1 %v1624_v12 }
 0x1f8   :  { %1288 = vmatprep.subr.mxu1 %v1547_v0 }
 0x1f9   :  { %1289 = vmatpush3.msra.mxu1 %v1628_v14 }
 0x1fa   :  { %1290 = vmatprep.subr.mxu1 %v1547_v0 }
 0x1fb   :  { %1291 = vmatpush3.msra.mxu1 %v1632_v16 }
 0x1fc   :  { %1292 = vmatprep.subr.mxu1 %v1547_v0 }
 0x1fd   :  { %1293 = vmatpush3.msra.mxu1 %v1636_v18 }
 0x1fe   :  { %1294 = vmatprep.subr.mxu1 %v1547_v0 }
 0x1ff   :  { %1295 = vmatpush3.msra.mxu1 %v1640_v20 }
 0x200   :  { %1296 = vmatprep.subr.mxu1 %v1547_v0 }
 0x201   :  { %1297 = vmatpush3.msra.mxu1 %v1644_v22 }
 0x202   :  { %1298 = vmatprep.subr.mxu1 %v1547_v0 }
 0x203   :  { %1299 = vmatpush3.msra.mxu1 %v1648_v24 }
 0x204   :  { %1300 = vmatprep.subr.mxu1 %v1547_v0 }
 0x205   :  { %1301 = vmatpush3.msra.mxu1 %v1652_v26 }
 0x206   :  { %1302 = vmatprep.subr.mxu1 %v1547_v0 }
 0x207   :  { %1303 = vmatpush3.msra.mxu1 %v1656_v28 }
 0x208   :  { %1304 = vmatprep.subr.mxu1 %v1547_v0 }
 0x209   :  { %1305 = vmatpush3.msra.mxu1 %v1664_v31 }
 0x20a   :  { %1306 = vmatprep.subr.mxu1 %v1547_v0 }
 0x20b   :  { %1307 = vmatpush3.msra.mxu1 %v1667_v33 }
 0x20c   :  { %1346 = vmatprep.subr.mxu1 %v1547_v0 }
 0x2ac   :  { %v432_v62 = vpop.f32.mrf.mxu1 }
 0x2ad   :  { %v436_v63 = vadd.f32 %v432_v62, %v177_v61 }
 0x2ae   :  { %v1240_v1 = vpop.f32.mrf.mxu1 }
 0x2af   :  { %1462 = vtanh.f32 %v436_v63 }
 0x2bc   :  { %v1463_v2 = vpop.eup %1462 }
 0x2bd   :  { %1274 = vmatmul.mubr.f32.vlgmr.msra.gmra.mxu0 %v1463_v2 }
 0x2be   :  { %1312 = vmatpush3.msra.mxu0 %v1606_v3  ;;  %1343 = vmatprep.mubr.msk.f32.mxu0 %vm1548_vm0, %v1547_v0 }
 0x2bf   :  { %1313 = vmatprep.subr.mxu0 %v1547_v0 }
 0x2c0   :  { %1314 = vmatpush3.msra.mxu0 %v1609_v4 }
 0x2c1   :  { %1315 = vmatprep.subr.mxu0 %v1547_v0 }
 0x2c2   :  { %1316 = vmatpush3.msra.mxu0 %v1612_v6 }
 0x2c3   :  { %1317 = vmatprep.subr.mxu0 %v1547_v0 }
 0x2c4   :  { %1318 = vmatpush3.msra.mxu0 %v1616_v8 }
 0x2c5   :  { %1319 = vmatprep.subr.mxu0 %v1547_v0 }
 0x2c6   :  { %1320 = vmatpush3.msra.mxu0 %v1620_v10 }
 0x2c7   :  { %1321 = vmatprep.subr.mxu0 %v1547_v0 }
 0x2c8   :  { %1322 = vmatpush3.msra.mxu0 %v1624_v12 }
 0x2c9   :  { %1323 = vmatprep.subr.mxu0 %v1547_v0 }
 0x2ca   :  { %1324 = vmatpush3.msra.mxu0 %v1628_v14 }
 0x2cb   :  { %1325 = vmatprep.subr.mxu0 %v1547_v0 }
 0x2cc   :  { %1326 = vmatpush3.msra.mxu0 %v1632_v16 }
 0x2cd   :  { %1327 = vmatprep.subr.mxu0 %v1547_v0 }
 0x2ce   :  { %1328 = vmatpush3.msra.mxu0 %v1636_v18 }
 0x2cf   :  { %1329 = vmatprep.subr.mxu0 %v1547_v0 }
 0x2d0   :  { %1330 = vmatpush3.msra.mxu0 %v1640_v20 }
 0x2d1   :  { %1331 = vmatprep.subr.mxu0 %v1547_v0 }
 0x2d2   :  { %1332 = vmatpush3.msra.mxu0 %v1644_v22 }
 0x2d3   :  { %1333 = vmatprep.subr.mxu0 %v1547_v0 }
 0x2d4   :  { %1334 = vmatpush3.msra.mxu0 %v1648_v24 }
 0x2d5   :  { %1335 = vmatprep.subr.mxu0 %v1547_v0 }
 0x2d6   :  { %1336 = vmatpush3.msra.mxu0 %v1652_v26 }
 0x2d7   :  { %1337 = vmatprep.subr.mxu0 %v1547_v0 }
 0x2d8   :  { %1338 = vmatpush3.msra.mxu0 %v1656_v28 }
 0x2d9   :  { %1339 = vmatprep.subr.mxu0 %v1547_v0 }
 0x2da   :  { %1340 = vmatpush3.msra.mxu0 %v1664_v31 }
 0x2db   :  { %1341 = vmatprep.subr.mxu0 %v1547_v0 }
 0x2dc   :  { %1342 = vmatpush3.msra.mxu0 %v1667_v33 }
 0x2dd   :  { %1381 = vmatprep.subr.mxu0 %v1547_v0 }
 0x37d   :  { %v504_v7 = vpop.f32.mrf.mxu0 }
 0x37e   :  { %v508_v9 = vadd.f32 %v504_v7, %v182_v5 }
 0x37f   :  { %v1275_v11 = vpop.f32.mrf.mxu0 }
 0x380   :  { %1464 = vtanh.f32 %v508_v9 }
 0x38d   :  { %v1465_v13 = vpop.eup %1464 }
 0x38e   :  { %1309 = vmatmul.mubr.f32.vlgmr.msra.gmra.mxu1 %v1465_v13 }
 0x38f   :  { %1347 = vmatpush3.msra.mxu1 %v1606_v3  ;;  %1378 = vmatprep.mubr.msk.f32.mxu1 %vm1548_vm0, %v1547_v0 }
 0x390   :  { %1348 = vmatprep.subr.mxu1 %v1547_v0 }
 0x391   :  { %1349 = vmatpush3.msra.mxu1 %v1609_v4 }
 0x392   :  { %1350 = vmatprep.subr.mxu1 %v1547_v0 }
 0x393   :  { %1351 = vmatpush3.msra.mxu1 %v1612_v6 }
 0x394   :  { %1352 = vmatprep.subr.mxu1 %v1547_v0 }
 0x395   :  { %1353 = vmatpush3.msra.mxu1 %v1616_v8 }
 0x396   :  { %1354 = vmatprep.subr.mxu1 %v1547_v0 }
 0x397   :  { %1355 = vmatpush3.msra.mxu1 %v1620_v10 }
 0x398   :  { %1356 = vmatprep.subr.mxu1 %v1547_v0 }
 0x399   :  { %1357 = vmatpush3.msra.mxu1 %v1624_v12 }
 0x39a   :  { %1358 = vmatprep.subr.mxu1 %v1547_v0 }
 0x39b   :  { %1359 = vmatpush3.msra.mxu1 %v1628_v14 }
 0x39c   :  { %1360 = vmatprep.subr.mxu1 %v1547_v0 }
 0x39d   :  { %1361 = vmatpush3.msra.mxu1 %v1632_v16 }
 0x39e   :  { %1362 = vmatprep.subr.mxu1 %v1547_v0 }
 0x39f   :  { %1363 = vmatpush3.msra.mxu1 %v1636_v18 }
 0x3a0   :  { %1364 = vmatprep.subr.mxu1 %v1547_v0 }
 0x3a1   :  { %1365 = vmatpush3.msra.mxu1 %v1640_v20 }
 0x3a2   :  { %1366 = vmatprep.subr.mxu1 %v1547_v0 }
 0x3a3   :  { %1367 = vmatpush3.msra.mxu1 %v1644_v22 }
 0x3a4   :  { %1368 = vmatprep.subr.mxu1 %v1547_v0 }
 0x3a5   :  { %1369 = vmatpush3.msra.mxu1 %v1648_v24 }
 0x3a6   :  { %1370 = vmatprep.subr.mxu1 %v1547_v0 }
 0x3a7   :  { %1371 = vmatpush3.msra.mxu1 %v1652_v26 }
 0x3a8   :  { %1372 = vmatprep.subr.mxu1 %v1547_v0 }
 0x3a9   :  { %1373 = vmatpush3.msra.mxu1 %v1656_v28 }
 0x3aa   :  { %1374 = vmatprep.subr.mxu1 %v1547_v0 }
 0x3ab   :  { %1375 = vmatpush3.msra.mxu1 %v1664_v31 }
 0x3ac   :  { %1376 = vmatprep.subr.mxu1 %v1547_v0 }
 0x3ad   :  { %1377 = vmatpush3.msra.mxu1 %v1667_v33 }
 0x3ae   :  { %1416 = vmatprep.subr.mxu1 %v1547_v0 }
 0x44e   :  { %v576_v17 = vpop.f32.mrf.mxu1 }
 0x44f   :  { %v580_v19 = vadd.f32 %v576_v17, %v187_v15 }
 0x450   :  { %v1310_v21 = vpop.f32.mrf.mxu1 }
 0x451   :  { %1466 = vtanh.f32 %v580_v19 }
 0x45e   :  { %v1467_v23 = vpop.eup %1466 }
 0x45f   :  { %1344 = vmatmul.mubr.f32.vlgmr.msra.gmra.mxu0 %v1467_v23 }
 0x460   :  { %1382 = vmatpush3.msra.mxu0 %v1606_v3  ;;  %1413 = vmatprep.mubr.msk.f32.mxu0 %vm1548_vm0, %v1547_v0  ;;  %v192_v3 = vadd.f32 %v1808_v52, %v1769_v44 }
 0x461   :  { %1383 = vmatprep.subr.mxu0 %v1547_v0 }
 0x462   :  { %1384 = vmatpush3.msra.mxu0 %v1609_v4 }
 0x463   :  { %1385 = vmatprep.subr.mxu0 %v1547_v0 }
 0x464   :  { %1386 = vmatpush3.msra.mxu0 %v1612_v6 }
 0x465   :  { %1387 = vmatprep.subr.mxu0 %v1547_v0 }
 0x466   :  { %1388 = vmatpush3.msra.mxu0 %v1616_v8 }
 0x467   :  { %1389 = vmatprep.subr.mxu0 %v1547_v0 }
 0x468   :  { %1390 = vmatpush3.msra.mxu0 %v1620_v10 }
 0x469   :  { %1391 = vmatprep.subr.mxu0 %v1547_v0 }
 0x46a   :  { %1392 = vmatpush3.msra.mxu0 %v1624_v12  ;;  %v814_v12 = vld [vmem:[#allocation6 + $0x78] sm:$0xff] }
 0x46b   :  { %1393 = vmatprep.subr.mxu0 %v1547_v0 }
 0x46c   :  { %1394 = vmatpush3.msra.mxu0 %v1628_v14  ;;  %v813_v14 = vld [vmem:[#allocation6 + $0x70] sm:$0xff] }
 0x46d   :  { %1395 = vmatprep.subr.mxu0 %v1547_v0 }
 0x46e   :  { %1396 = vmatpush3.msra.mxu0 %v1632_v16  ;;  %v812_v16 = vld [vmem:[#allocation6 + $0x68] sm:$0xff] }
 0x46f   :  { %1397 = vmatprep.subr.mxu0 %v1547_v0 }
 0x470   :  { %1398 = vmatpush3.msra.mxu0 %v1636_v18  ;;  %v811_v18 = vld [vmem:[#allocation6 + $0x60] sm:$0xff] }
 0x471   :  { %1399 = vmatprep.subr.mxu0 %v1547_v0 }
 0x472   :  { %1400 = vmatpush3.msra.mxu0 %v1640_v20  ;;  %v810_v20 = vld [vmem:[#allocation6 + $0x58] sm:$0xff] }
 0x473   :  { %1401 = vmatprep.subr.mxu0 %v1547_v0 }
 0x474   :  { %1402 = vmatpush3.msra.mxu0 %v1644_v22  ;;  %v809_v22 = vld [vmem:[#allocation6 + $0x50] sm:$0xff] }
 0x475   :  { %1403 = vmatprep.subr.mxu0 %v1547_v0 }
 0x476   :  { %1404 = vmatpush3.msra.mxu0 %v1648_v24  ;;  %v808_v24 = vld [vmem:[#allocation6 + $0x48] sm:$0xff] }
 0x477   :  { %1405 = vmatprep.subr.mxu0 %v1547_v0 }
 0x478   :  { %1406 = vmatpush3.msra.mxu0 %v1652_v26 }
 0x479   :  { %1407 = vmatprep.subr.mxu0 %v1547_v0 }
 0x47a   :  { %1408 = vmatpush3.msra.mxu0 %v1656_v28 }
 0x47b   :  { %1409 = vmatprep.subr.mxu0 %v1547_v0 }
 0x47c   :  { %1410 = vmatpush3.msra.mxu0 %v1664_v31  ;;  %v806_v31 = vld [vmem:[#allocation6 + $0x38] sm:$0xff] }
 0x47d   :  { %1411 = vmatprep.subr.mxu0 %v1547_v0 }
 0x47e   :  { %1412 = vmatpush3.msra.mxu0 %v1667_v33  ;;  %v804_v33 = vld [vmem:[#allocation6 + $0x28] sm:$0xff] }
 0x51f   :  { %v648_v4 = vpop.f32.mrf.mxu0 }
 0x520   :  { %v652_v6 = vadd.f32 %v648_v4, %v192_v3 }
 0x521   :  { %v1345_v8 = vpop.f32.mrf.mxu0 }
 0x522   :  { %1468 = vtanh.f32 %v652_v6 }
 0x52f   :  { %v1469_v10 = vpop.eup %1468 }
 0x530   :  { %1379 = vmatmul.mubr.f32.vlgmr.msra.gmra.mxu1 %v1469_v10 }
 0x531   :  { %1448 = vmatprep.mubr.msk.f32.mxu1 %vm1548_vm0, %v1547_v0  ;;  %1417 = vmatpush3.msra.mxu1 %v814_v12 }
 0x532   :  { %1418 = vmatprep.subr.mxu1 %v1547_v0 }
 0x533   :  { %1419 = vmatpush3.msra.mxu1 %v813_v14 }
 0x534   :  { %1420 = vmatprep.subr.mxu1 %v1547_v0 }
 0x535   :  { %1421 = vmatpush3.msra.mxu1 %v812_v16 }
 0x536   :  { %1422 = vmatprep.subr.mxu1 %v1547_v0 }
 0x537   :  { %1423 = vmatpush3.msra.mxu1 %v811_v18 }
 0x538   :  { %1424 = vmatprep.subr.mxu1 %v1547_v0 }
 0x539   :  { %1425 = vmatpush3.msra.mxu1 %v810_v20 }
 0x53a   :  { %1426 = vmatprep.subr.mxu1 %v1547_v0 }
 0x53b   :  { %1427 = vmatpush3.msra.mxu1 %v809_v22 }
 0x53c   :  { %1428 = vmatprep.subr.mxu1 %v1547_v0 }
 0x53d   :  { %1429 = vmatpush3.msra.mxu1 %v808_v24 }
 0x53e   :  { %1430 = vmatprep.subr.mxu1 %v1547_v0 }
 0x53f   :  { %1431 = vmatpush3.msra.mxu1 %v807_v30 }
 0x540   :  { %1432 = vmatprep.subr.mxu1 %v1547_v0 }
 0x541   :  { %1433 = vmatpush3.msra.mxu1 %v806_v31 }
 0x542   :  { %1434 = vmatprep.subr.mxu1 %v1547_v0 }
 0x543   :  { %1435 = vmatpush3.msra.mxu1 %v805_v32 }
 0x544   :  { %1436 = vmatprep.subr.mxu1 %v1547_v0 }
 0x545   :  { %1437 = vmatpush3.msra.mxu1 %v804_v33 }
 0x546   :  { %1438 = vmatprep.subr.mxu1 %v1547_v0 }
 0x547   :  { %1439 = vmatpush3.msra.mxu1 %v803_v34 }
 0x548   :  { %1440 = vmatprep.subr.mxu1 %v1547_v0 }
 0x549   :  { %1441 = vmatpush3.msra.mxu1 %v802_v35 }
 0x54a   :  { %1442 = vmatprep.subr.mxu1 %v1547_v0 }
 0x54b   :  { %1443 = vmatpush3.msra.mxu1 %v801_v36 }
 0x54c   :  { %1444 = vmatprep.subr.mxu1 %v1547_v0 }
 0x54d   :  { %1445 = vmatpush3.msra.mxu1 %v800_v37 }
 0x54e   :  { %1446 = vmatprep.subr.mxu1 %v1547_v0 }
 0x54f   :  { %1447 = vmatpush3.msra.mxu1 %v799_v38 }
 0x5f0   :  { %v720_v26 = vpop.f32.mrf.mxu1 }
 0x5f1   :  { %v724_v27 = vadd.f32 %v720_v26, %v197_v25 }
 0x5f2   :  { %v1380_v28 = vpop.f32.mrf.mxu1 }
 0x5f3   :  { %1470 = vtanh.f32 %v724_v27 }
 0x600   :  { %v1471_v29 = vpop.eup %1470 }
 0x601   :  { %1414 = vmatmul.mubr.f32.vlgmr.msra.gmra.mxu0 %v1471_v29 }
 0x6c1   :  { %v792_v40 = vpop.f32.mrf.mxu0 }
 0x6c2   :  { %v796_v41 = vadd.f32 %v792_v40, %v202_v39 }
 0x6c3   :  { %v1415_v42 = vpop.f32.mrf.mxu0 }
 0x6c4   :  { %1472 = vtanh.f32 %v796_v41 }
 0x6d1   :  { %v1473_v43 = vpop.eup %1472 }
 0x6d2   :  { %798 = vst [vmem:[%s1997_s8] sm:$0xff] %v1473_v43  ;;  %1449 = vmatmul.mubr.f32.vlgmr.msra.gmra.mxu1 %v1473_v43 }
 0x792   :  { %v888_v0 = vpop.f32.mrf.mxu1 }
 0x793   :  { %v889_v46 = vadd.f32 %v914_v45, %v888_v0 }
 0x794   :  { %v1450_v47 = vpop.f32.mrf.mxu1 }
 0x795   :  { %892 = vmax.xlane.f32.xlu0 %v889_v46 }
 0x81e   :  { %v893_v48 = vpop.xlane.xlu0 %892 }
 0x81f   :  { %v894_v44 = vsub.f32 %v889_v46, %v893_v48 }
 0x821   :  { %v895_v49 = vmul.f32 1.442695, %v894_v44 }
 0x823   :  { %1474 = vpow2.f32 %v895_v49 }
 0x830   :  { %v1475_v50 = vpop.eup %1474 }
 0x831   :  { %897 = vadd.xlane.f32.xlu0 %v1475_v50 }
 0x8ba   :  { %v898_v51 = vpop.xlane.xlu0 %897 }
 0x8bb   :  { %1476 = vlog2.f32 %v898_v51 }
 0x8c8   :  { %v1477_v52 = vpop.eup %1476 }
 0x8c9   :  { %v900_v53 = vmul.f32 0.6931472, %v1477_v52 }
 0x8cb   :  { %v901_v54 = vsub.f32 %v894_v44, %v900_v53 }
 0x8cd   :  { %902 = vst [vmem:[%s1996_s7] sm:$0xff] %v901_v54 }
 0x8ce   :  { %911 = vsyncpa [#allocation3], 1 }
 0x8cf   :  { %912 = vsyncpa [#allocation5], 1 }

</bundles_post_ra>
